<compile_context>
chip_gen: v6e
topology: v6e:2x2x1
jax: 0.10.0
libtpu: 0.0.40
codegen_flags: <defaults>
</compile_context>

<pallas_src>
import functools

import jax
import jax.numpy as jnp
from jax import lax
from jax.experimental import pallas as pl
from jax.experimental.pallas import tpu as pltpu

N_K = 5      # number of boxes (hardcoded in the module)
BOX = 50     # box size h = w = 50 (hardcoded in the module)


def _random_boxes_kernel(coord_ref, img_ref, out_ref, *, channels):
    """coord_ref (SMEM, int32, shape (2*N_K,)): [y0, x0, y1, x1, ...].
    img_ref / out_ref: (TILE_H, W*C) lane-dense VMEM blocks."""
    tile_h, wc = img_ref.shape
    row_lo = pl.program_id(0) * tile_h
    row_hi = row_lo + tile_h

    # Scalar "does any box touch this row tile?" check (SMEM reads only).
    any_hit = None
    for k in range(N_K):
        y = coord_ref[2 * k]
        hit = (y < row_hi) & (y + BOX > row_lo)
        any_hit = hit if any_hit is None else (any_hit | hit)

    @pl.when(jnp.logical_not(any_hit))
    def _copy():
        # No box intersects this row tile: plain copy, no mask work.
        out_ref[...] = img_ref[...]

    @pl.when(any_hit)
    def _mask():
        # Hoisted iotas: (tile_h, 1) global row ids, (1, W*C) flat column ids.
        rows = lax.broadcasted_iota(jnp.int32, (tile_h, 1), 0) + row_lo
        cols = lax.broadcasted_iota(jnp.int32, (1, wc), 1)
        inside = jnp.zeros((tile_h, wc), dtype=jnp.bool_)
        for k in range(N_K):   # static unroll, N_K = 5
            y = coord_ref[2 * k]
            x = coord_ref[2 * k + 1]
            row_ok = (rows >= y) & (rows < y + BOX)                          # (tile_h, 1)
            col_ok = (cols >= x * channels) & (cols < (x + BOX) * channels)  # (1, W*C)
            inside = inside | (row_ok & col_ok)
        x_val = img_ref[...]
        out_ref[...] = jnp.where(inside, jnp.zeros((), x_val.dtype), x_val)


def _pick_tile_h(H, row_bytes, *, target_bytes=2 << 20, max_bytes=4 << 20):
    """Pick a row-tile height: ~2 MiB blocks, <= 4 MiB (v7x VMEM headroom with
    double-buffered in+out), multiple of 8, and >= 2 grid steps so both
    TensorCores of a megacore / v7x chip get work."""
    if H <= 8:
        return H
    tile_h = min(H, max(8, target_bytes // max(row_bytes, 1)))
    tile_h = max(8, (tile_h // 8) * 8)
    while tile_h * row_bytes > max_bytes and tile_h > 8:
        tile_h -= 8
    if pl.cdiv(H, tile_h) < 2:
        tile_h = max(8, ((((H + 1) // 2) + 7) // 8) * 8)
    return min(tile_h, H)


def _apply_boxes_2d(img2d, coords, channels):
    H, WC = img2d.shape
    itemsize = jnp.dtype(img2d.dtype).itemsize
    tile_h = _pick_tile_h(H, WC * itemsize)
    grid = (pl.cdiv(H, tile_h),)   # partial last tile handled by Pallas padding
    kernel = functools.partial(_random_boxes_kernel, channels=channels)
    return pl.pallas_call(
        kernel,
        out_shape=jax.ShapeDtypeStruct(img2d.shape, img2d.dtype),
        grid_spec=pltpu.PrefetchScalarGridSpec(
            num_scalar_prefetch=1,
            grid=grid,
            in_specs=[pl.BlockSpec((tile_h, WC), lambda i, c: (i, 0))],
            out_specs=pl.BlockSpec((tile_h, WC), lambda i, c: (i, 0)),
        ),
        compiler_params=pltpu.CompilerParams(
            dimension_semantics=("parallel",)),
        cost_estimate=pl.CostEstimate(
            flops=5 * H * WC,
            transcendentals=0,
            bytes_accessed=2 * H * WC * itemsize),
    )(coords, img2d)


def random_boxes(img: jax.Array, scalars: jax.Array) -> jax.Array:
    """img: (H, W, C) HWC image. scalars: int32 (1 + 2*N_K,) = [flag, y0, x0, ...]."""
    H, W, C = img.shape
    flag = scalars[0]
    coords = scalars[1:]
    img2d = img.reshape(H, W * C)          # lane-dense view (last dim = W*C)
    out2d = lax.cond(
        flag != 0,
        lambda im: _apply_boxes_2d(im, coords, C),
        lambda im: im,                      # identity fast path: no kernel traffic
        img2d)
    return out2d.reshape(H, W, C)


def make_scalars(key: jax.Array, img_shape, p: float = 0.5) -> jax.Array:
    """Deterministic replacement for decision() + np.random.randint draws."""
    # TODO(synk): the original's print('random_box') host side effect and the host-side
    # Python/numpy RNG have no kernel equivalent; draws are precomputed here with jax.random.
    k_flag, k_box = jax.random.split(key)
    flag = (jax.random.uniform(k_flag) < p).astype(jnp.int32)
    img_size = img_shape[1]  # module uses img.shape[1] (W for HWC)
    coords = jax.random.randint(k_box, (N_K, 2), 0, img_size - BOX, dtype=jnp.int32)
    return jnp.concatenate([flag[None], coords.reshape(-1)]).astype(jnp.int32)


def reference(img, scalars):
    """Plain-JAX reference mirroring the torch/numpy semantics."""
    H, W, C = img.shape
    rows = jnp.arange(H)[:, None]
    cols = jnp.arange(W)[None, :]
    inside = jnp.zeros((H, W), dtype=bool)
    for k in range(N_K):
        y = scalars[1 + 2 * k]
        x = scalars[2 + 2 * k]
        inside = inside | ((rows >= y) & (rows < y + BOX) & (cols >= x) & (cols < x + BOX))
    zero_it = inside & (scalars[0] != 0)
    return jnp.where(zero_it[:, :, None], jnp.zeros((), img.dtype), img)


if __name__ == "__main__":
    key = jax.random.PRNGKey(0)
    k_img, k_aug, k_img2, k_aug2 = jax.random.split(key, 4)

    rb = jax.jit(random_boxes)

    # Case 1: augmentation applied (flag forced on), 64x64x8 image -> W*C = 512 lanes.
    H, W, C = 64, 64, 8
    img = jax.random.normal(k_img, (H, W, C), dtype=jnp.float32)
    scal = make_scalars(k_aug, (H, W, C), p=1.0)     # uniform in [0,1) < 1.0 -> flag = 1
    out = jax.block_until_ready(rb(img, scal))
    assert out.shape == img.shape and out.dtype == img.dtype
    assert jnp.allclose(out, reference(img, scal)), "mismatch on boxed path"

    # Case 2: identity fast path (flag forced off).
    scal0 = scal.at[0].set(0)
    out0 = jax.block_until_ready(rb(img, scal0))
    assert jnp.allclose(out0, img), "mismatch on identity path"

    # Case 3: H not divisible by the chosen tile (partial last block), C = 3 (W*C = 192).
    H2, W2, C2 = 72, 64, 3
    img2 = jax.random.normal(k_img2, (H2, W2, C2), dtype=jnp.float32)
    scal2 = make_scalars(k_aug2, (H2, W2, C2), p=1.0)
    out2 = jax.block_until_ready(rb(img2, scal2))
    assert jnp.allclose(out2, reference(img2, scal2)), "mismatch on partial-tile path"

    print("KERNEL_OK")
</pallas_src>

<mosaic_0001>
module attributes {stable_mosaic.version = 11 : i64} {
  func.func @_random_boxes_kernel(%arg0: i32, %arg1: memref<10xi32, #tpu.memory_space<smem>>, %arg2: memref<32x512xf32, #tpu.memory_space<vmem>>, %arg3: memref<32x512xf32, #tpu.memory_space<vmem>>) attributes {dimension_semantics = [#tpu.dimension_semantics<parallel>], iteration_bounds = array<i64: 2>, scalar_prefetch = 1 : i64, scratch_operands = 0 : i64, tpu.core_type = #tpu.core_type<tc>, window_params = [{transform_indices = @transform_0, window_bounds = array<i64: 32, 512>}, {transform_indices = @transform_1, window_bounds = array<i64: 32, 512>}]} {
    %c32_i32 = arith.constant 32 : i32
    %0 = arith.muli %arg0, %c32_i32 : i32
    %c32_i32_0 = arith.constant 32 : i32
    %1 = arith.addi %0, %c32_i32_0 : i32
    %c0 = arith.constant 0 : index
    %2 = memref.load %arg1[%c0] : memref<10xi32, #tpu.memory_space<smem>>
    %3 = arith.cmpi slt, %2, %1 : i32
    %c50_i32 = arith.constant 50 : i32
    %4 = arith.addi %2, %c50_i32 : i32
    %5 = arith.cmpi sgt, %4, %0 : i32
    %6 = arith.andi %3, %5 : i1
    %c2 = arith.constant 2 : index
    %7 = memref.load %arg1[%c2] : memref<10xi32, #tpu.memory_space<smem>>
    %8 = arith.cmpi slt, %7, %1 : i32
    %c50_i32_1 = arith.constant 50 : i32
    %9 = arith.addi %7, %c50_i32_1 : i32
    %10 = arith.cmpi sgt, %9, %0 : i32
    %11 = arith.andi %8, %10 : i1
    %12 = arith.ori %6, %11 : i1
    %c4 = arith.constant 4 : index
    %13 = memref.load %arg1[%c4] : memref<10xi32, #tpu.memory_space<smem>>
    %14 = arith.cmpi slt, %13, %1 : i32
    %c50_i32_2 = arith.constant 50 : i32
    %15 = arith.addi %13, %c50_i32_2 : i32
    %16 = arith.cmpi sgt, %15, %0 : i32
    %17 = arith.andi %14, %16 : i1
    %18 = arith.ori %12, %17 : i1
    %c6 = arith.constant 6 : index
    %19 = memref.load %arg1[%c6] : memref<10xi32, #tpu.memory_space<smem>>
    %20 = arith.cmpi slt, %19, %1 : i32
    %c50_i32_3 = arith.constant 50 : i32
    %21 = arith.addi %19, %c50_i32_3 : i32
    %22 = arith.cmpi sgt, %21, %0 : i32
    %23 = arith.andi %20, %22 : i1
    %24 = arith.ori %18, %23 : i1
    %c8 = arith.constant 8 : index
    %25 = memref.load %arg1[%c8] : memref<10xi32, #tpu.memory_space<smem>>
    %26 = arith.cmpi slt, %25, %1 : i32
    %c50_i32_4 = arith.constant 50 : i32
    %27 = arith.addi %25, %c50_i32_4 : i32
    %28 = arith.cmpi sgt, %27, %0 : i32
    %29 = arith.andi %26, %28 : i1
    %30 = arith.ori %24, %29 : i1
    %true = arith.constant true
    %31 = arith.xori %30, %true : i1
    %32 = arith.extui %31 : i1 to i32
    %c0_i32 = arith.constant 0 : i32
    %33 = arith.cmpi ne, %32, %c0_i32 : i32
    scf.if %33 {
      %c0_6 = arith.constant 0 : index
      %c0_7 = arith.constant 0 : index
      %36 = vector.load %arg2[%c0_6, %c0_7] : memref<32x512xf32, #tpu.memory_space<vmem>>, vector<32x512xf32>
      %c0_8 = arith.constant 0 : index
      %c0_9 = arith.constant 0 : index
      %37 = vector.load %arg3[%c0_8, %c0_9] : memref<32x512xf32, #tpu.memory_space<vmem>>, vector<32x512xf32>
      tpu.vector_store %arg3[%c0_8, %c0_9], %36 {strides = array<i32>} : memref<32x512xf32, #tpu.memory_space<vmem>>, vector<32x512xf32>,
    } else {
    }
    %34 = arith.extui %30 : i1 to i32
    %c0_i32_5 = arith.constant 0 : i32
    %35 = arith.cmpi ne, %34, %c0_i32_5 : i32
    scf.if %35 {
      %36 = tpu.iota {dimensions = array<i32: 0>} : vector<32x1xi32>
      %37 = vector.broadcast %0 : i32 to vector<32x1xi32>
      %38 = arith.addi %36, %37 : vector<32x1xi32>
      %39 = tpu.iota {dimensions = array<i32: 1>} : vector<1x512xi32>
      %false = arith.constant false
      %40 = vector.broadcast %false : i1 to vector<32x512xi1>
      %c0_6 = arith.constant 0 : index
      %41 = memref.load %arg1[%c0_6] : memref<10xi32, #tpu.memory_space<smem>>
      %c1 = arith.constant 1 : index
      %42 = memref.load %arg1[%c1] : memref<10xi32, #tpu.memory_space<smem>>
      %43 = vector.broadcast %41 : i32 to vector<32x1xi32>
      %44 = arith.cmpi sge, %38, %43 : vector<32x1xi32>
      %c50_i32_7 = arith.constant 50 : i32
      %45 = arith.addi %41, %c50_i32_7 : i32
      %46 = vector.broadcast %45 : i32 to vector<32x1xi32>
      %47 = arith.cmpi slt, %38, %46 : vector<32x1xi32>
      %48 = arith.andi %44, %47 : vector<32x1xi1>
      %c8_i32 = arith.constant 8 : i32
      %49 = arith.muli %42, %c8_i32 : i32
      %50 = vector.broadcast %49 : i32 to vector<1x512xi32>
      %51 = arith.cmpi sge, %39, %50 : vector<1x512xi32>
      %c50_i32_8 = arith.constant 50 : i32
      %52 = arith.addi %42, %c50_i32_8 : i32
      %c8_i32_9 = arith.constant 8 : i32
      %53 = arith.muli %52, %c8_i32_9 : i32
      %54 = vector.broadcast %53 : i32 to vector<1x512xi32>
      %55 = arith.cmpi slt, %39, %54 : vector<1x512xi32>
      %56 = arith.andi %51, %55 : vector<1x512xi1>
      %57 = vector.broadcast %48 : vector<32x1xi1> to vector<32x512xi1>
      %58 = vector.broadcast %56 : vector<1x512xi1> to vector<32x512xi1>
      %59 = arith.andi %57, %58 : vector<32x512xi1>
      %60 = arith.ori %40, %59 : vector<32x512xi1>
      %c2_10 = arith.constant 2 : index
      %61 = memref.load %arg1[%c2_10] : memref<10xi32, #tpu.memory_space<smem>>
      %c3 = arith.constant 3 : index
      %62 = memref.load %arg1[%c3] : memref<10xi32, #tpu.memory_space<smem>>
      %63 = vector.broadcast %61 : i32 to vector<32x1xi32>
      %64 = arith.cmpi sge, %38, %63 : vector<32x1xi32>
      %c50_i32_11 = arith.constant 50 : i32
      %65 = arith.addi %61, %c50_i32_11 : i32
      %66 = vector.broadcast %65 : i32 to vector<32x1xi32>
      %67 = arith.cmpi slt, %38, %66 : vector<32x1xi32>
      %68 = arith.andi %64, %67 : vector<32x1xi1>
      %c8_i32_12 = arith.constant 8 : i32
      %69 = arith.muli %62, %c8_i32_12 : i32
      %70 = vector.broadcast %69 : i32 to vector<1x512xi32>
      %71 = arith.cmpi sge, %39, %70 : vector<1x512xi32>
      %c50_i32_13 = arith.constant 50 : i32
      %72 = arith.addi %62, %c50_i32_13 : i32
      %c8_i32_14 = arith.constant 8 : i32
      %73 = arith.muli %72, %c8_i32_14 : i32
      %74 = vector.broadcast %73 : i32 to vector<1x512xi32>
      %75 = arith.cmpi slt, %39, %74 : vector<1x512xi32>
      %76 = arith.andi %71, %75 : vector<1x512xi1>
      %77 = vector.broadcast %68 : vector<32x1xi1> to vector<32x512xi1>
      %78 = vector.broadcast %76 : vector<1x512xi1> to vector<32x512xi1>
      %79 = arith.andi %77, %78 : vector<32x512xi1>
      %80 = arith.ori %60, %79 : vector<32x512xi1>
      %c4_15 = arith.constant 4 : index
      %81 = memref.load %arg1[%c4_15] : memref<10xi32, #tpu.memory_space<smem>>
      %c5 = arith.constant 5 : index
      %82 = memref.load %arg1[%c5] : memref<10xi32, #tpu.memory_space<smem>>
      %83 = vector.broadcast %81 : i32 to vector<32x1xi32>
      %84 = arith.cmpi sge, %38, %83 : vector<32x1xi32>
      %c50_i32_16 = arith.constant 50 : i32
      %85 = arith.addi %81, %c50_i32_16 : i32
      %86 = vector.broadcast %85 : i32 to vector<32x1xi32>
      %87 = arith.cmpi slt, %38, %86 : vector<32x1xi32>
      %88 = arith.andi %84, %87 : vector<32x1xi1>
      %c8_i32_17 = arith.constant 8 : i32
      %89 = arith.muli %82, %c8_i32_17 : i32
      %90 = vector.broadcast %89 : i32 to vector<1x512xi32>
      %91 = arith.cmpi sge, %39, %90 : vector<1x512xi32>
      %c50_i32_18 = arith.constant 50 : i32
      %92 = arith.addi %82, %c50_i32_18 : i32
      %c8_i32_19 = arith.constant 8 : i32
      %93 = arith.muli %92, %c8_i32_19 : i32
      %94 = vector.broadcast %93 : i32 to vector<1x512xi32>
      %95 = arith.cmpi slt, %39, %94 : vector<1x512xi32>
      %96 = arith.andi %91, %95 : vector<1x512xi1>
      %97 = vector.broadcast %88 : vector<32x1xi1> to vector<32x512xi1>
      %98 = vector.broadcast %96 : vector<1x512xi1> to vector<32x512xi1>
      %99 = arith.andi %97, %98 : vector<32x512xi1>
      %100 = arith.ori %80, %99 : vector<32x512xi1>
      %c6_20 = arith.constant 6 : index
      %101 = memref.load %arg1[%c6_20] : memref<10xi32, #tpu.memory_space<smem>>
      %c7 = arith.constant 7 : index
      %102 = memref.load %arg1[%c7] : memref<10xi32, #tpu.memory_space<smem>>
      %103 = vector.broadcast %101 : i32 to vector<32x1xi32>
      %104 = arith.cmpi sge, %38, %103 : vector<32x1xi32>
      %c50_i32_21 = arith.constant 50 : i32
      %105 = arith.addi %101, %c50_i32_21 : i32
      %106 = vector.broadcast %105 : i32 to vector<32x1xi32>
      %107 = arith.cmpi slt, %38, %106 : vector<32x1xi32>
      %108 = arith.andi %104, %107 : vector<32x1xi1>
      %c8_i32_22 = arith.constant 8 : i32
      %109 = arith.muli %102, %c8_i32_22 : i32
      %110 = vector.broadcast %109 : i32 to vector<1x512xi32>
      %111 = arith.cmpi sge, %39, %110 : vector<1x512xi32>
      %c50_i32_23 = arith.constant 50 : i32
      %112 = arith.addi %102, %c50_i32_23 : i32
      %c8_i32_24 = arith.constant 8 : i32
      %113 = arith.muli %112, %c8_i32_24 : i32
      %114 = vector.broadcast %113 : i32 to vector<1x512xi32>
      %115 = arith.cmpi slt, %39, %114 : vector<1x512xi32>
      %116 = arith.andi %111, %115 : vector<1x512xi1>
      %117 = vector.broadcast %108 : vector<32x1xi1> to vector<32x512xi1>
      %118 = vector.broadcast %116 : vector<1x512xi1> to vector<32x512xi1>
      %119 = arith.andi %117, %118 : vector<32x512xi1>
      %120 = arith.ori %100, %119 : vector<32x512xi1>
      %c8_25 = arith.constant 8 : index
      %121 = memref.load %arg1[%c8_25] : memref<10xi32, #tpu.memory_space<smem>>
      %c9 = arith.constant 9 : index
      %122 = memref.load %arg1[%c9] : memref<10xi32, #tpu.memory_space<smem>>
      %123 = vector.broadcast %121 : i32 to vector<32x1xi32>
      %124 = arith.cmpi sge, %38, %123 : vector<32x1xi32>
      %c50_i32_26 = arith.constant 50 : i32
      %125 = arith.addi %121, %c50_i32_26 : i32
      %126 = vector.broadcast %125 : i32 to vector<32x1xi32>
      %127 = arith.cmpi slt, %38, %126 : vector<32x1xi32>
      %128 = arith.andi %124, %127 : vector<32x1xi1>
      %c8_i32_27 = arith.constant 8 : i32
      %129 = arith.muli %122, %c8_i32_27 : i32
      %130 = vector.broadcast %129 : i32 to vector<1x512xi32>
      %131 = arith.cmpi sge, %39, %130 : vector<1x512xi32>
      %c50_i32_28 = arith.constant 50 : i32
      %132 = arith.addi %122, %c50_i32_28 : i32
      %c8_i32_29 = arith.constant 8 : i32
      %133 = arith.muli %132, %c8_i32_29 : i32
      %134 = vector.broadcast %133 : i32 to vector<1x512xi32>
      %135 = arith.cmpi slt, %39, %134 : vector<1x512xi32>
      %136 = arith.andi %131, %135 : vector<1x512xi1>
      %137 = vector.broadcast %128 : vector<32x1xi1> to vector<32x512xi1>
      %138 = vector.broadcast %136 : vector<1x512xi1> to vector<32x512xi1>
      %139 = arith.andi %137, %138 : vector<32x512xi1>
      %140 = arith.ori %120, %139 : vector<32x512xi1>
      %c0_30 = arith.constant 0 : index
      %c0_31 = arith.constant 0 : index
      %141 = vector.load %arg2[%c0_30, %c0_31] : memref<32x512xf32, #tpu.memory_space<vmem>>, vector<32x512xf32>
      %cst = arith.constant 0.000000e+00 : f32
      %142 = vector.broadcast %cst : f32 to vector<32x512xf32>
      %143 = arith.select %140, %142, %141 : vector<32x512xi1>, vector<32x512xf32>
      %c0_32 = arith.constant 0 : index
      %c0_33 = arith.constant 0 : index
      %144 = vector.load %arg3[%c0_32, %c0_33] : memref<32x512xf32, #tpu.memory_space<vmem>>, vector<32x512xf32>
      tpu.vector_store %arg3[%c0_32, %c0_33], %143 {strides = array<i32>} : memref<32x512xf32, #tpu.memory_space<vmem>>, vector<32x512xf32>,
    } else {
    }
    return
  }
  func.func @transform_0(%arg0: i32, %arg1: memref<10xi32, #tpu.memory_space<smem>>) -> (i32, i32) {
    %c0_i32 = arith.constant 0 : i32
    %c0_i32_0 = arith.constant 0 : i32
    return %arg0, %c0_i32 : i32, i32
  }
  func.func @transform_1(%arg0: i32, %arg1: memref<10xi32, #tpu.memory_space<smem>>) -> (i32, i32) {
    %c0_i32 = arith.constant 0 : i32
    %c0_i32_0 = arith.constant 0 : i32
    return %arg0, %c0_i32 : i32, i32
  }
}

</mosaic_0001>

<bundles_post_ra>
// kernel: branch_1_fun.1
= control target key start
LH: loop header
LB: loop body
LE: loop exit
PB: predicated region body
PF: predicated region fallthrough
CT: control target
= control target key end

     0   :  { %s1707_s0 = inlined_call_operand.vmem [shape: s32[10], index: 0, kind: input, shape index: {}]   ;;  %s1708_s1 = inlined_call_operand.vmem [shape: f32[64,512], index: 1, kind: input, shape index: {}]   ;;  %s1709_s2 = inlined_call_operand.vmem [shape: f32[64,512], index: 2, kind: output, shape index: {}]  }
   0x1   :  { %s7_s11 = sshll.u32 %s1707_s0, 4  ;;  %s8_s11 = int_to_ptr.vmem [resolvable:$true] %s7_s11 }
   0x2   :  { %s779_s12 = scalar_lea.vmem %s8_s11, 16  ;;  %p784_p1 = scmp.lt.s32.totalorder %s8_s11, %s8_s11 }
   0x3   :  { %p780_p0 = scmp.ne.s32.totalorder %s8_s11, %s779_s12  ;;  %p785_p2 = scmp.lt.s32.totalorder %s779_s12, %s779_s12 }
   0x5   :  { %p786_p3 = por %p785_p2, %p784_p1 }
   0x7   :  { %p787_p4 = pnand %p786_p3, %p780_p0 }
   0x9   :  { %790 = shalt.err (!%p787_p4)  }
   0xa   :  { %s801_s13 = smov [#allocation3]  }
   0xb   :  { %10 = dma.vmem_to_smem %s8_s11, 16, %s801_s13, [#allocation2] }
   0xc   :  { %795 = dma.done.wait [#allocation2], 16 }
   0xd   :  { %796 = vsyncadd [#allocation2], 4294967280 }
   0xe   :  { %12 = sfence }
   0xf   :  { %s820_s14 = smov 0  }
  0x10 LB: > { %s721_s0 = sadd.s32 4294967295, %s799_s14   ;;  %p725_p5 = scmp.ge.s32.totalorder %s799_s14, 1  ;;  %s799_s14 = sphi %s820_s14, %s18_s14  }
  0x11   : > { %p96_p6 = scmp.lt.s32.totalorder %s799_s14, 3 }
  0x13   : > { %p97_p7 = pnand %p725_p5, %p96_p6 }
  0x14   : > { %s726_s15 = sshll.u32 (!%p97_p7), %s721_s0, 2  ;;  %s828_s16 = sshll.u32 (!%p97_p7), %s721_s0, 5 }
  0x15   : > { %100 = sbr.rel (%p97_p7) target bundleno = 258 (0x102), region = 24  ;;  %p119_p8 = scmp.lt.s32.totalorder (!%p97_p7), %s726_s15, 7 }
  0x16   : > { %s134_s17 = sld [smem:[#allocation3]] (!%p97_p7)  ;;  %s831_s18 = sadd.s32 (!%p97_p7), 32, %s828_s16 }
  0x17   : > { %s733_s19 = sld [smem:[#allocation3 + $0x2]] (!%p97_p7) }
  0x18   : > { %s734_s21 = sld [smem:[#allocation3 + $0x4]] (!%p97_p7) }
  0x19   : > { %s735_s28 = sld [smem:[#allocation3 + $0x6]] (!%p97_p7) }
  0x1a   : > { %s1926_s15 = smov (!%p119_p8, %s726_s15), 7  ;;  %s736_s30 = sld [smem:[#allocation3 + $0x8]] }
  0x1b   : > { %s758_s20 = sshll.u32 %s1926_s15, 5 }
  0x1c   : > { %s836_s24 = scalar_lea.vmem %s1708_s1, %s758_s20  ;;  %s841_s27 = scalar_lea.vmem %s1709_s2, %s758_s20 }
  0x1d   : > { %p135_p9 = scmp.lt.s32.totalorder %s134_s17, %s831_s18  ;;  %s136_s29 = sadd.s32 50, %s134_s17 }
  0x1e   : > { %p137_p10 = scmp.gt.s32.totalorder %s136_s29, %s828_s16  ;;  %p141_p11 = scmp.lt.s32.totalorder %s733_s19, %s831_s18 }
  0x1f   : > { %s142_s3 = sadd.s32 50, %s733_s19  ;;  %p148_p0 = scmp.lt.s32.totalorder %s734_s21, %s831_s18 }
  0x20   : > { %p846_p12 = pnand %p137_p10, %p135_p9  ;;  %p143_p13 = scmp.gt.s32.totalorder %s142_s3, %s828_s16 }
  0x21   : > { %s149_s5 = sadd.s32 50, %s734_s21  ;;  %p155_p4 = scmp.lt.s32.totalorder %s735_s28, %s831_s18 }
  0x22   : > { %p139_p1 = pneg %p846_p12  ;;  %p144_p2 = pnand %p143_p13, %p141_p11 }
  0x23   : > { %p150_p3 = scmp.gt.s32.totalorder %s149_s5, %s828_s16  ;;  %s156_s6 = sadd.s32 50, %s735_s28 }
  0x24   : > { %p145_p5 = pneg %p144_p2  ;;  %p157_p7 = scmp.gt.s32.totalorder %s156_s6, %s828_s16 }
  0x25   : > { %p151_p6 = pnand %p150_p3, %p148_p0  ;;  %p162_p12 = scmp.lt.s32.totalorder %s736_s30, %s831_s18 }
  0x26   : > { %p146_p8 = por %p145_p5, %p139_p1  ;;  %p158_p10 = pnand %p157_p7, %p155_p4 }
  0x27   : > { %p152_p9 = pneg %p151_p6  ;;  %s163_s7 = sadd.s32 50, %s736_s30 }
  0x28   : > { %p159_p13 = pneg %p158_p10  ;;  %p164_p2 = scmp.gt.s32.totalorder %s163_s7, %s828_s16 }
  0x29   : > { %p153_p11 = por %p152_p9, %p146_p8 }
  0x2a   : > { %p165_p3 = pnand %p164_p2, %p162_p12 }
  0x2b   : > { %p160_p0 = por %p159_p13, %p153_p11 }
  0x2c   : > { %p166_p1 = pneg %p165_p3 }
  0x2e   : > { %p859_p5 = por %p166_p1, %p160_p0 }
  0x2f   : > { %v171_v0 = vlaneseq (%p859_p5)  ;;  %s186_s9 = sld [smem:[#allocation3]] (%p859_p5)  ;;  %v866_v1 = vstv (%p859_p5), %s828_s16  ;;  %v1757_v11 = vmov (%p859_p5), 0  ;;  %v1759_v15 = vmov (%p859_p5), 0  ;;  %v580_v39 = vld [vmem:[%s836_s24] sm:$0xff] (%p859_p5)  ;;  %v581_v49 = vld [vmem:[%s836_s24 + $0x8] sm:$0xff] (%p859_p5)  ;;  %v582_v57 = vld [vmem:[%s836_s24 + $0x10] sm:$0xff] (%p859_p5) }
  0x30   : > { %170 = sbr.rel (!%p859_p5) target bundleno = 244 (0xf4), region = 28  ;;  %s737_s10 = sld [smem:[#allocation3 + $0x1]] (%p859_p5)  ;;  %v1763_v22 = vmov (%p859_p5), 0  ;;  %v1767_v28 = vmov (%p859_p5), 0  ;;  %v1769_v29 = vmov (%p859_p5), 0  ;;  %v1773_v35 = vmov (%p859_p5), 0 }
  0x31   : > { %v868_v2 = vshrl.u32 (%p859_p5), %v171_v0, 7  ;;  %s740_s11 = sld [smem:[#allocation3 + $0x2]] (%p859_p5)  ;;  %v885_v6 = vand.u32 (%p859_p5), 127, %v171_v0  ;;  %v1777_v38 = vmov (%p859_p5), 0  ;;  %v1779_v41 = vmov (%p859_p5), 0  ;;  %v588_v37 = vld [vmem:[%s836_s24 + $0x40] sm:$0xff] (%p859_p5) }
  0x32   : > { %s870_s12 = sld [smem:[#allocation3 + $0x3]] (%p859_p5)  ;;  %v1783_v43 = vmov (%p859_p5), 0  ;;  %v1785_v45 = vmov (%p859_p5), 0  ;;  %v1788_v47 = vmov (%p859_p5), 0  ;;  %v1791_v48 = vmov (%p859_p5), 0 }
  0x33   : > { %v874_v3 = vadd.s32 (%p859_p5), %v866_v1, %v868_v2  ;;  %s876_s13 = sld [smem:[#allocation3 + $0x4]] (%p859_p5)  ;;  %v174_v4 = vadd.s32 (%p859_p5), 16, %v868_v2  ;;  %v183_v36 = vadd.s32 (%p859_p5), 128, %v885_v6  ;;  %v175_v42 = vadd.s32 (%p859_p5), 24, %v868_v2 }
  0x34   : > { %s878_s0 = sld [smem:[#allocation3 + $0x5]] (%p859_p5)  ;;  %v184_v46 = vadd.s32 (%p859_p5), 256, %v885_v6  ;;  %v1793_v51 = vmov (%p859_p5), 0  ;;  %v1795_v52 = vmov (%p859_p5), 0  ;;  %v1797_v53 = vmov (%p859_p5), 0 }
  0x35   : > { %v881_v5 = vstv %s186_s9  ;;  %s193_s15 = sadd.s32 50, %s186_s9  ;;  %s883_s16 = sld [smem:[#allocation3 + $0x6]]  ;;  %v894_v8 = vadd.s32 %v866_v1, %v174_v4  ;;  %v1112_v44 = vadd.s32 %v866_v1, %v175_v42  ;;  %v185_v54 = vadd.s32 384, %v885_v6  ;;  %v590_v42 = vld [vmem:[%s836_s24 + $0x50] sm:$0xff] }
  0x36   : > { %vm189_vm0 = vcmp.ge.s32.totalorder %v874_v3, %v881_v5  ;;  %v889_v7 = vstv %s193_s15  ;;  %s738_s17 = sshll.u32 %s737_s10, 3  ;;  %s891_s18 = sld [smem:[#allocation3 + $0x7]]  ;;  %v1800_v55 = vmov 0  ;;  %v1802_v56 = vmov 0 }
  0x37   : > { %vm195_vm1 = vcmp.lt.s32.totalorder %v874_v3, %v889_v7  ;;  %v898_v9 = vstv %s738_s17  ;;  %s761_s19 = sadd.s32 400, %s738_s17  ;;  %v900_v10 = vstv %s740_s11  ;;  %s259_s20 = sadd.s32 50, %s740_s11  ;;  %v1804_v59 = vmov 0 }
  0x38   : > { %vm902_vm2 = vmand %vm189_vm0, %vm195_vm1  ;;  %vm205_vm3 = vcmp.ge.s32.totalorder %v885_v6, %v898_v9  ;;  %v908_v12 = vstv %s761_s19  ;;  %v910_v13 = vstv %s259_s20  ;;  %s742_s21 = sshll.u32 %s870_s12, 3  ;;  %s913_s22 = sld [smem:[#allocation3 + $0x8]]  ;;  %vm255_vm5 = vcmp.ge.s32.totalorder %v874_v3, %v900_v10 }
  0x39   : > { %v1758_v11 = vsel %vm902_vm2, 4294967295, %v1757_v11  ;;  %vm212_vm4 = vcmp.lt.s32.totalorder %v885_v6, %v908_v12  ;;  %vm261_vm6 = vcmp.lt.s32.totalorder %v874_v3, %v910_v13  ;;  %v921_v14 = vstv %s742_s21  ;;  %s763_s23 = sadd.s32 400, %s742_s21  ;;  %s341_s25 = sadd.s32 50, %s876_s13 }
  0x3a   : > { %vm924_vm7 = vmand %vm205_vm3, %vm212_vm4  ;;  %vm271_vm8 = vcmp.ge.s32.totalorder %v885_v6, %v921_v14  ;;  %v930_v16 = vstv %s763_s23  ;;  %v933_v17 = vstv %s876_s13  ;;  %v935_v18 = vstv %s341_s25  ;;  %s746_s26 = sshll.u32 %s878_s0, 3  ;;  %s938_s28 = sld [smem:[#allocation3 + $0x9]] }
  0x3b   : > { %v1760_v15 = vsel %vm924_vm7, 4294967295, %v1759_v15  ;;  %vm236_vm9 = vmand %vm902_vm2, %vm924_vm7  ;;  %vm278_vm10 = vcmp.lt.s32.totalorder %v885_v6, %v930_v16  ;;  %v946_v19 = vstv %s746_s26  ;;  %s765_s29 = sadd.s32 400, %s746_s26  ;;  %s423_s30 = sadd.s32 50, %s883_s16  ;;  %vm337_vm13 = vcmp.ge.s32.totalorder %v874_v3, %v933_v17 }
  0x3c   : > { %vm955_vm11 = vmand %vm255_vm5, %vm261_vm6  ;;  %v959_v21 = vstv %s765_s29  ;;  %s750_s3 = sshll.u32 %s891_s18, 3  ;;  %vm343_vm14 = vcmp.lt.s32.totalorder %v874_v3, %v935_v18  ;;  %vm353_vm0 = vcmp.ge.s32.totalorder %v885_v6, %v946_v19  ;;  %v979_v23 = vstv %s883_s16 }
  0x3d   : > { %vm962_vm12 = vmand %vm271_vm8, %vm278_vm10  ;;  %s767_s4 = sadd.s32 400, %s750_s3  ;;  %vm360_vm1 = vcmp.lt.s32.totalorder %v885_v6, %v959_v21  ;;  %v981_v24 = vstv %s423_s30  ;;  %v992_v26 = vstv %s750_s3  ;;  %vm419_vm6 = vcmp.ge.s32.totalorder %v874_v3, %v979_v23 }
  0x3e   : > { %v1764_v22 = vsel %vm962_vm12, 4294967295, %v1763_v22  ;;  %vm302_vm15 = vmand %vm955_vm11, %vm962_vm12  ;;  %v994_v27 = vstv %s767_s4  ;;  %s505_s5 = sadd.s32 50, %s913_s22  ;;  %vm425_vm8 = vcmp.lt.s32.totalorder %v874_v3, %v981_v24  ;;  %vm435_vm10 = vcmp.ge.s32.totalorder %v885_v6, %v992_v26 }
  0x3f   : > { %vm988_vm3 = vmor %vm236_vm9, %vm302_vm15  ;;  %v1019_v30 = vstv %s913_s22  ;;  %v1021_v31 = vstv %s505_s5  ;;  %vm206_vm12 = vcmp.ge.s32.totalorder %v183_v36, %v898_v9  ;;  %v1807_v60 = vmov 0 }
  0x40   : > { %vm997_vm4 = vmand %vm337_vm13, %vm343_vm14  ;;  %s754_s6 = sshll.u32 %s938_s28, 3  ;;  %vm442_vm13 = vcmp.lt.s32.totalorder %v885_v6, %v994_v27  ;;  %v173_v61 = vadd.s32 8, %v868_v2  ;;  %v1809_v62 = vmov 0  ;;  %v1811_v0 = vmov 0 }
  0x41   : > { %v1768_v28 = vsel %vm997_vm4, 4294967295, %v1767_v28  ;;  %vm1002_vm5 = vmand %vm353_vm0, %vm360_vm1  ;;  %s769_s7 = sadd.s32 400, %s754_s6  ;;  %v1025_v32 = vstv %s754_s6  ;;  %vm501_vm1 = vcmp.ge.s32.totalorder %v874_v3, %v1019_v30  ;;  %v1813_v2 = vmov 0 }
  0x42   : > { %v1770_v29 = vsel %vm1002_vm5, 4294967295, %v1769_v29  ;;  %vm384_vm9 = vmand %vm997_vm4, %vm1002_vm5  ;;  %v1027_v33 = vstv %s769_s7  ;;  %vm507_vm5 = vcmp.lt.s32.totalorder %v874_v3, %v1021_v31  ;;  %v178_v63 = vadd.s32 %v866_v1, %v173_v61  ;;  %v583_v1 = vld [vmem:[%s836_s24 + $0x18] sm:$0xff] }
  0x43   : > { %vm400_vm14 = vmor %vm988_vm3, %vm384_vm9 }
  0x44   : > { %vm1029_vm15 = vmand %vm419_vm6, %vm425_vm8  ;;  %vm517_vm6 = vcmp.ge.s32.totalorder %v885_v6, %v1025_v32  ;;  %vm524_vm8 = vcmp.lt.s32.totalorder %v885_v6, %v1027_v33 }
  0x45   : > { %vm1033_vm0 = vmand %vm435_vm10, %vm442_vm13 }
  0x46   : > { %v1774_v35 = vsel %vm1033_vm0, 4294967295, %v1773_v35  ;;  %vm466_vm3 = vmand %vm1029_vm15, %vm1033_vm0  ;;  %vm213_vm0 = vcmp.lt.s32.totalorder %v183_v36, %v908_v12 }
  0x47   : > { %vm482_vm9 = vmor %vm400_vm14, %vm466_vm3 }
  0x48   : > { %vm1050_vm10 = vmand %vm501_vm1, %vm507_vm5  ;;  %vm518_vm1 = vcmp.ge.s32.totalorder %v183_v36, %v1025_v32 }
  0x49   : > { %vm1054_vm13 = vmand %vm517_vm6, %vm524_vm8  ;;  %vm354_vm8 = vcmp.ge.s32.totalorder %v183_v36, %v946_v19 }
  0x4a   : > { %v1778_v38 = vsel %vm1054_vm13, 4294967295, %v1777_v38  ;;  %vm548_vm7 = vmand %vm1050_vm10, %vm1054_vm13 }
  0x4b   : > { %vm564_vm6 = vmor %vm482_vm9, %vm548_vm7  ;;  %vm361_vm9 = vcmp.lt.s32.totalorder %v183_v36, %v959_v21 }
  0x4c   : > { %v596_v40 = vsel %vm564_vm6, 0.0, %v580_v39  ;;  %vm1079_vm14 = vmand %vm206_vm12, %vm213_vm0  ;;  %vm1781_vm0 = vcmp.lt.s32.totalorder %v183_v36, %v930_v16  ;;  %vm1782_vm6 = vcmp.ge.s32.totalorder %v183_v36, %v921_v14 }
  0x4d   : > { %v1780_v41 = vsel %vm1079_vm14, 4294967295, %v1779_v41  ;;  %612 = vst [vmem:[%s841_s27] sm:$0xff] %v596_v40  ;;  %vm237_vm13 = vmand %vm902_vm2, %vm1079_vm14 }
  0x4e   : > { %vm1101_vm7 = vmand %vm1782_vm6, %vm1781_vm0  ;;  %vm443_vm0 = vcmp.lt.s32.totalorder %v183_v36, %v994_v27 }
  0x4f   : > { %v1784_v43 = vsel %vm1101_vm7, 4294967295, %v1783_v43  ;;  %vm303_vm5 = vmand %vm955_vm11, %vm1101_vm7 }
  0x50   : > { %vm319_vm12 = vmor %vm237_vm13, %vm303_vm5 }
  0x51   : > { %vm1116_vm6 = vmand %vm354_vm8, %vm361_vm9  ;;  %vm1787_vm8 = vcmp.ge.s32.totalorder %v183_v36, %v992_v26 }
  0x52   : > { %v1786_v45 = vsel %vm1116_vm6, 4294967295, %v1785_v45  ;;  %vm385_vm5 = vmand %vm997_vm4, %vm1116_vm6  ;;  %vm273_vm4 = vcmp.ge.s32.totalorder %v184_v46, %v921_v14 }
  0x53   : > { %vm401_vm3 = vmor %vm319_vm12, %vm385_vm5  ;;  %vm525_vm12 = vcmp.lt.s32.totalorder %v183_v36, %v1027_v33 }
  0x54   : > { %vm1149_vm9 = vmand %vm1787_vm8, %vm443_vm0  ;;  %vm207_vm0 = vcmp.ge.s32.totalorder %v184_v46, %v898_v9  ;;  %vm214_vm8 = vcmp.lt.s32.totalorder %v184_v46, %v908_v12 }
  0x55   : > { %v1789_v47 = vsel %vm1149_vm9, 4294967295, %v1788_v47  ;;  %vm1790_vm5 = vmmov %vm1029_vm15 }
  0x56   : > { %vm467_vm13 = vmand %vm1790_vm5, %vm1149_vm9  ;;  %vm280_vm9 = vcmp.lt.s32.totalorder %v184_v46, %v930_v16 }
  0x57   : > { %vm483_vm7 = vmor %vm401_vm3, %vm467_vm13 }
  0x58   : > { %vm1159_vm15 = vmand %vm518_vm1, %vm525_vm12 }
  0x59   : > { %v1792_v48 = vsel %vm1159_vm15, 4294967295, %v1791_v48  ;;  %vm549_vm6 = vmand %vm1050_vm10, %vm1159_vm15 }
  0x5a   : > { %vm565_vm14 = vmor %vm483_vm7, %vm549_vm6  ;;  %vm355_vm7 = vcmp.ge.s32.totalorder %v184_v46, %v946_v19  ;;  %vm362_vm6 = vcmp.lt.s32.totalorder %v184_v46, %v959_v21 }
  0x5b   : > { %v597_v50 = vsel %vm565_vm14, 0.0, %v581_v49  ;;  %vm1172_vm1 = vmand %vm207_vm0, %vm214_vm8  ;;  %vm1799_vm8 = vnez %v1768_v28  ;;  %v591_v49 = vld [vmem:[%s836_s24 + $0x58] sm:$0xff] }
  0x5c   : > { %v1794_v51 = vsel %vm1172_vm1, 4294967295, %v1793_v51  ;;  %613 = vst [vmem:[%s841_s27 + $0x8] sm:$0xff] %v597_v50  ;;  %vm238_vm3 = vmand %vm902_vm2, %vm1172_vm1 }
  0x5d   : > { %vm1181_vm13 = vmand %vm273_vm4, %vm280_vm9  ;;  %vm437_vm4 = vcmp.ge.s32.totalorder %v184_v46, %v992_v26  ;;  %vm444_vm9 = vcmp.lt.s32.totalorder %v184_v46, %v994_v27 }
  0x5e   : > { %v1796_v52 = vsel %vm1181_vm13, 4294967295, %v1795_v52  ;;  %vm304_vm14 = vmand %vm955_vm11, %vm1181_vm13 }
  0x5f   : > { %vm320_vm12 = vmor %vm238_vm3, %vm304_vm14  ;;  %vm519_vm3 = vcmp.ge.s32.totalorder %v184_v46, %v1025_v32 }
  0x60   : > { %vm1191_vm0 = vmand %vm355_vm7, %vm362_vm6  ;;  %vm526_vm7 = vcmp.lt.s32.totalorder %v184_v46, %v1027_v33 }
  0x61   : > { %v1798_v53 = vsel %vm1191_vm0, 4294967295, %v1797_v53  ;;  %vm386_vm1 = vmand %vm1799_vm8, %vm1191_vm0  ;;  %vm274_vm0 = vcmp.ge.s32.totalorder %v185_v54, %v921_v14  ;;  %v584_v14 = vld [vmem:[%s836_s24 + $0x20] sm:$0xff] }
  0x62   : > { %vm402_vm15 = vmor %vm320_vm12, %vm386_vm1  ;;  %vm208_vm1 = vcmp.ge.s32.totalorder %v185_v54, %v898_v9  ;;  %vm215_vm12 = vcmp.lt.s32.totalorder %v185_v54, %v908_v12 }
  0x63   : > { %vm1202_vm2 = vmand %vm437_vm4, %vm444_vm9 }
  0x64   : > { %v1801_v55 = vsel %vm1202_vm2, 4294967295, %v1800_v55  ;;  %vm468_vm6 = vmand %vm1790_vm5, %vm1202_vm2  ;;  %vm281_vm2 = vcmp.lt.s32.totalorder %v185_v54, %v930_v16 }
  0x65   : > { %vm484_vm14 = vmor %vm402_vm15, %vm468_vm6 }
  0x66   : > { %vm1212_vm13 = vmand %vm519_vm3, %vm526_vm7  ;;  %vm1806_vm3 = vnez %v1758_v11 }
  0x67   : > { %v1803_v56 = vsel %vm1212_vm13, 4294967295, %v1802_v56  ;;  %vm550_vm4 = vmand %vm1050_vm10, %vm1212_vm13 }
  0x68   : > { %vm566_vm9 = vmor %vm484_vm14, %vm550_vm4  ;;  %vm356_vm14 = vcmp.ge.s32.totalorder %v185_v54, %v946_v19  ;;  %vm363_vm4 = vcmp.lt.s32.totalorder %v185_v54, %v959_v21  ;;  %v585_v19 = vld [vmem:[%s836_s24 + $0x28] sm:$0xff]  ;;  %v586_v21 = vld [vmem:[%s836_s24 + $0x30] sm:$0xff] }
  0x69   : > { %v598_v58 = vsel %vm566_vm9, 0.0, %v582_v57  ;;  %vm1225_vm15 = vmand %vm208_vm1, %vm215_vm12 }
  0x6a   : > { %v1805_v59 = vsel %vm1225_vm15, 4294967295, %v1804_v59  ;;  %614 = vst [vmem:[%s841_s27 + $0x10] sm:$0xff] %v598_v58  ;;  %vm239_vm7 = vmand %vm1806_vm3, %vm1225_vm15 }
  0x6b   : > { %vm1234_vm6 = vmand %vm274_vm0, %vm281_vm2  ;;  %vm438_vm2 = vcmp.ge.s32.totalorder %v185_v54, %v992_v26  ;;  %vm445_vm0 = vcmp.lt.s32.totalorder %v185_v54, %v994_v27  ;;  %v587_v26 = vld [vmem:[%s836_s24 + $0x38] sm:$0xff] }
  0x6c   : > { %v1808_v60 = vsel %vm1234_vm6, 4294967295, %v1807_v60  ;;  %vm305_vm1 = vmand %vm955_vm11, %vm1234_vm6 }
  0x6d   : > { %vm321_vm12 = vmor %vm239_vm7, %vm305_vm1  ;;  %vm520_vm7 = vcmp.ge.s32.totalorder %v185_v54, %v1025_v32 }
  0x6e   : > { %vm1245_vm9 = vmand %vm356_vm14, %vm363_vm4  ;;  %vm527_vm14 = vcmp.lt.s32.totalorder %v185_v54, %v1027_v33 }
  0x6f   : > { %v1810_v62 = vsel %vm1245_vm9, 4294967295, %v1809_v62  ;;  %vm387_vm3 = vmand %vm1799_vm8, %vm1245_vm9  ;;  %vm190_vm8 = vcmp.ge.s32.totalorder %v178_v63, %v881_v5 }
  0x70   : > { %vm403_vm15 = vmor %vm321_vm12, %vm387_vm3  ;;  %vm196_vm12 = vcmp.lt.s32.totalorder %v178_v63, %v889_v7  ;;  %vm256_vm3 = vcmp.ge.s32.totalorder %v178_v63, %v900_v10 }
  0x71   : > { %vm1256_vm11 = vmand %vm438_vm2, %vm445_vm0 }
  0x72   : > { %v1812_v0 = vsel %vm1256_vm11, 4294967295, %v1811_v0  ;;  %vm469_vm4 = vmand %vm1790_vm5, %vm1256_vm11  ;;  %vm262_vm5 = vcmp.lt.s32.totalorder %v178_v63, %v910_v13 }
  0x73   : > { %vm485_vm1 = vmor %vm403_vm15, %vm469_vm4 }
  0x74   : > { %vm1266_vm6 = vmand %vm520_vm7, %vm527_vm14  ;;  %vm1817_vm7 = vnez %v1760_v15 }
  0x75   : > { %v1814_v2 = vsel %vm1266_vm6, 4294967295, %v1813_v2  ;;  %vm551_vm2 = vmand %vm1050_vm10, %vm1266_vm6  ;;  %vm338_vm10 = vcmp.ge.s32.totalorder %v178_v63, %v933_v17 }
  0x76   : > { %vm567_vm0 = vmor %vm485_vm1, %vm551_vm2  ;;  %vm344_vm1 = vcmp.lt.s32.totalorder %v178_v63, %v935_v18 }
  0x77   : > { %v599_v3 = vsel %vm567_vm0, 0.0, %v583_v1  ;;  %vm1279_vm15 = vmand %vm190_vm8, %vm196_vm12  ;;  %vm1820_vm8 = vnez %v1764_v22 }
  0x78   : > { %615 = vst [vmem:[%s841_s27 + $0x18] sm:$0xff] %v599_v3  ;;  %vm240_vm14 = vmand %vm1279_vm15, %vm1817_vm7  ;;  %vm1823_vm7 = vnez %v1770_v29 }
  0x79   : > { %vm1288_vm4 = vmand %vm256_vm3, %vm262_vm5  ;;  %vm420_vm3 = vcmp.ge.s32.totalorder %v178_v63, %v979_v23  ;;  %vm426_vm5 = vcmp.lt.s32.totalorder %v178_v63, %v981_v24 }
  0x7a   : > { %vm306_vm12 = vmand %vm1288_vm4, %vm1820_vm8 }
  0x7b   : > { %vm322_vm2 = vmor %vm240_vm14, %vm306_vm12  ;;  %vm502_vm14 = vcmp.ge.s32.totalorder %v178_v63, %v1019_v30 }
  0x7c   : > { %vm1298_vm0 = vmand %vm338_vm10, %vm344_vm1  ;;  %vm508_vm10 = vcmp.lt.s32.totalorder %v178_v63, %v1021_v31  ;;  %vm1826_vm1 = vnez %v1774_v35 }
  0x7d   : > { %vm388_vm6 = vmand %vm1298_vm0, %vm1823_vm7 }
  0x7e   : > { %vm404_vm11 = vmor %vm322_vm2, %vm388_vm6  ;;  %vm1829_vm6 = vnez %v1778_v38 }
  0x7f   : > { %vm1308_vm9 = vmand %vm420_vm3, %vm426_vm5  ;;  %vm1830_vm5 = vnez %v1780_v41 }
  0x80   : > { %vm470_vm12 = vmand %vm1308_vm9, %vm1826_vm1  ;;  %vm1834_vm1 = vnez %v1792_v48 }
  0x81   : > { %vm486_vm8 = vmor %vm404_vm11, %vm470_vm12  ;;  %vm1831_vm11 = vnez %v1784_v43  ;;  %vm1832_vm12 = vnez %v1786_v45 }
  0x82   : > { %vm1318_vm13 = vmand %vm502_vm14, %vm508_vm10 }
  0x83   : > { %vm552_vm2 = vmand %vm1318_vm13, %vm1829_vm6 }
  0x84   : > { %vm568_vm3 = vmor %vm486_vm8, %vm552_vm2  ;;  %vm1833_vm2 = vnez %v1789_v47 }
  0x85   : > { %v600_v16 = vsel %vm568_vm3, 0.0, %v584_v14  ;;  %vm241_vm7 = vmand %vm1279_vm15, %vm1830_vm5 }
  0x86   : > { %616 = vst [vmem:[%s841_s27 + $0x20] sm:$0xff] %v600_v16  ;;  %vm307_vm14 = vmand %vm1288_vm4, %vm1831_vm11 }
  0x87   : > { %vm323_vm10 = vmor %vm241_vm7, %vm307_vm14  ;;  %vm1835_vm14 = vnez %v1794_v51 }
  0x88   : > { %vm389_vm6 = vmand %vm1298_vm0, %vm1832_vm12  ;;  %vm1839_vm12 = vnez %v1803_v56 }
  0x89   : > { %vm405_vm8 = vmor %vm323_vm10, %vm389_vm6  ;;  %vm1836_vm10 = vnez %v1796_v52 }
  0x8a   : > { %vm471_vm3 = vmand %vm1308_vm9, %vm1833_vm2  ;;  %vm1837_vm2 = vnez %v1798_v53 }
  0x8b   : > { %vm487_vm5 = vmor %vm405_vm8, %vm471_vm3 }
  0x8c   : > { %vm553_vm11 = vmand %vm1318_vm13, %vm1834_vm1 }
  0x8d   : > { %vm569_vm7 = vmor %vm487_vm5, %vm553_vm11  ;;  %vm1838_vm11 = vnez %v1801_v55 }
  0x8e   : > { %v601_v20 = vsel %vm569_vm7, 0.0, %v585_v19  ;;  %vm242_vm6 = vmand %vm1279_vm15, %vm1835_vm14 }
  0x8f   : > { %617 = vst [vmem:[%s841_s27 + $0x28] sm:$0xff] %v601_v20  ;;  %vm308_vm8 = vmand %vm1288_vm4, %vm1836_vm10 }
  0x90   : > { %vm324_vm3 = vmor %vm242_vm6, %vm308_vm8  ;;  %vm1840_vm8 = vnez %v1805_v59 }
  0x91   : > { %vm390_vm1 = vmand %vm1298_vm0, %vm1837_vm2 }
  0x92   : > { %vm406_vm5 = vmor %vm324_vm3, %vm390_vm1  ;;  %vm1841_vm3 = vnez %v1808_v60 }
  0x93   : > { %vm472_vm7 = vmand %vm1308_vm9, %vm1838_vm11  ;;  %vm1842_vm11 = vnez %v1810_v62 }
  0x94   : > { %vm488_vm14 = vmor %vm406_vm5, %vm472_vm7 }
  0x95   : > { %vm554_vm10 = vmand %vm1318_vm13, %vm1839_vm12 }
  0x96   : > { %vm570_vm6 = vmor %vm488_vm14, %vm554_vm10  ;;  %vm1843_vm14 = vnez %v1812_v0 }
  0x97   : > { %v602_v25 = vsel %vm570_vm6, 0.0, %v586_v21  ;;  %vm243_vm1 = vmand %vm1279_vm15, %vm1840_vm8  ;;  %vm1844_vm15 = vnez %v1814_v2 }
  0x98   : > { %618 = vst [vmem:[%s841_s27 + $0x30] sm:$0xff] %v602_v25  ;;  %vm309_vm5 = vmand %vm1288_vm4, %vm1841_vm3  ;;  %vm1874_vm3 = vnez %v1792_v48 }
  0x99   : > { %vm325_vm7 = vmor %vm243_vm1, %vm309_vm5  ;;  %vm1845_vm1 = vcmp.lt.s32.totalorder %v894_v8, %v889_v7 }
  0x9a   : > { %vm391_vm12 = vmand %vm1298_vm0, %vm1842_vm11  ;;  %vm1846_vm0 = vcmp.ge.s32.totalorder %v894_v8, %v881_v5  ;;  %vm1872_vm11 = vnez %v1786_v45 }
  0x9b   : > { %vm407_vm2 = vmor %vm325_vm7, %vm391_vm12  ;;  %vm1854_vm7 = vnez %v1764_v22 }
  0x9c   : > { %vm473_vm10 = vmand %vm1308_vm9, %vm1843_vm14  ;;  %vm1849_vm9 = vnez %v1760_v15 }
  0x9d   : > { %vm489_vm6 = vmor %vm407_vm2, %vm473_vm10 }
  0x9e   : > { %vm555_vm8 = vmand %vm1318_vm13, %vm1844_vm15  ;;  %vm1850_vm13 = vcmp.lt.s32.totalorder %v894_v8, %v910_v13 }
  0x9f   : > { %vm571_vm4 = vmor %vm489_vm6, %vm555_vm8  ;;  %vm1851_vm8 = vcmp.ge.s32.totalorder %v894_v8, %v900_v10 }
  0xa0   : > { %v603_v27 = vsel %vm571_vm4, 0.0, %v587_v26  ;;  %vm1399_vm12 = vmand %vm1846_vm0, %vm1845_vm1  ;;  %vm1855_vm4 = vcmp.lt.s32.totalorder %v894_v8, %v935_v18  ;;  %vm1856_vm1 = vcmp.ge.s32.totalorder %v894_v8, %v933_v17 }
  0xa1   : > { %619 = vst [vmem:[%s841_s27 + $0x38] sm:$0xff] %v603_v27  ;;  %vm244_vm2 = vmand %vm1399_vm12, %vm1849_vm9 }
  0xa2   : > { %vm1414_vm5 = vmand %vm1851_vm8, %vm1850_vm13  ;;  %vm1859_vm13 = vnez %v1770_v29 }
  0xa3   : > { %vm310_vm10 = vmand %vm1414_vm5, %vm1854_vm7  ;;  %vm1860_vm7 = vcmp.lt.s32.totalorder %v894_v8, %v981_v24 }
  0xa4   : > { %vm326_vm6 = vmor %vm244_vm2, %vm310_vm10  ;;  %vm1861_vm2 = vcmp.ge.s32.totalorder %v894_v8, %v979_v23 }
  0xa5   : > { %vm1428_vm0 = vmand %vm1856_vm1, %vm1855_vm4  ;;  %vm1864_vm4 = vnez %v1774_v35 }
  0xa6   : > { %vm392_vm8 = vmand %vm1428_vm0, %vm1859_vm13 }
  0xa7   : > { %vm408_vm9 = vmor %vm326_vm6, %vm392_vm8  ;;  %vm1865_vm6 = vcmp.lt.s32.totalorder %v894_v8, %v1021_v31  ;;  %vm1866_vm8 = vcmp.ge.s32.totalorder %v894_v8, %v1019_v30  ;;  %v589_v8 = vld [vmem:[%s836_s24 + $0x48] sm:$0xff] }
  0xa8   : > { %vm1442_vm10 = vmand %vm1861_vm2, %vm1860_vm7  ;;  %vm1869_vm7 = vnez %v1778_v38 }
  0xa9   : > { %vm474_vm1 = vmand %vm1442_vm10, %vm1864_vm4 }
  0xaa   : > { %vm490_vm15 = vmor %vm408_vm9, %vm474_vm1  ;;  %vm1870_vm9 = vnez %v1780_v41 }
  0xab   : > { %vm1456_vm13 = vmand %vm1866_vm8, %vm1865_vm6  ;;  %vm1871_vm6 = vnez %v1784_v43 }
  0xac   : > { %vm556_vm2 = vmand %vm1456_vm13, %vm1869_vm7 }
  0xad   : > { %vm572_vm14 = vmor %vm490_vm15, %vm556_vm2 }
  0xae   : > { %v604_v39 = vsel %vm572_vm14, 0.0, %v588_v37  ;;  %vm245_vm1 = vmand %vm1399_vm12, %vm1870_vm9  ;;  %vm1873_vm14 = vnez %v1789_v47 }
  0xaf   : > { %620 = vst [vmem:[%s841_s27 + $0x40] sm:$0xff] %v604_v39  ;;  %vm311_vm8 = vmand %vm1414_vm5, %vm1871_vm6 }
  0xb0   : > { %vm327_vm4 = vmor %vm245_vm1, %vm311_vm8  ;;  %vm1875_vm8 = vnez %v1794_v51 }
  0xb1   : > { %vm393_vm7 = vmand %vm1428_vm0, %vm1872_vm11  ;;  %vm1879_vm11 = vnez %v1803_v56 }
  0xb2   : > { %vm409_vm15 = vmor %vm327_vm4, %vm393_vm7  ;;  %vm1876_vm7 = vnez %v1796_v52 }
  0xb3   : > { %vm475_vm2 = vmand %vm1442_vm10, %vm1873_vm14  ;;  %vm1877_vm14 = vnez %v1798_v53 }
  0xb4   : > { %vm491_vm9 = vmor %vm409_vm15, %vm475_vm2 }
  0xb5   : > { %vm557_vm6 = vmand %vm1456_vm13, %vm1874_vm3 }
  0xb6   : > { %vm573_vm1 = vmor %vm491_vm9, %vm557_vm6  ;;  %vm1878_vm6 = vnez %v1801_v55 }
  0xb7   : > { %v605_v40 = vsel %vm573_vm1, 0.0, %v589_v8  ;;  %vm246_vm4 = vmand %vm1399_vm12, %vm1875_vm8 }
  0xb8   : > { %621 = vst [vmem:[%s841_s27 + $0x48] sm:$0xff] %v605_v40  ;;  %vm312_vm15 = vmand %vm1414_vm5, %vm1876_vm7 }
  0xb9   : > { %vm328_vm2 = vmor %vm246_vm4, %vm312_vm15  ;;  %vm1880_vm15 = vnez %v1805_v59 }
  0xba   : > { %vm394_vm3 = vmand %vm1428_vm0, %vm1877_vm14 }
  0xbb   : > { %vm410_vm9 = vmor %vm328_vm2, %vm394_vm3  ;;  %vm1881_vm2 = vnez %v1808_v60 }
  0xbc   : > { %vm476_vm1 = vmand %vm1442_vm10, %vm1878_vm6  ;;  %vm1882_vm6 = vnez %v1810_v62 }
  0xbd   : > { %vm492_vm8 = vmor %vm410_vm9, %vm476_vm1 }
  0xbe   : > { %vm558_vm7 = vmand %vm1456_vm13, %vm1879_vm11 }
  0xbf   : > { %vm574_vm4 = vmor %vm492_vm8, %vm558_vm7  ;;  %vm1883_vm8 = vnez %v1812_v0 }
  0xc0   : > { %v606_v46 = vsel %vm574_vm4, 0.0, %v590_v42  ;;  %vm247_vm3 = vmand %vm1399_vm12, %vm1880_vm15  ;;  %vm1884_vm12 = vnez %v1814_v2 }
  0xc1   : > { %622 = vst [vmem:[%s841_s27 + $0x50] sm:$0xff] %v606_v46  ;;  %vm313_vm9 = vmand %vm1414_vm5, %vm1881_vm2  ;;  %vm1914_vm2 = vnez %v1792_v48 }
  0xc2   : > { %vm329_vm1 = vmor %vm247_vm3, %vm313_vm9  ;;  %vm1885_vm3 = vcmp.lt.s32.totalorder %v1112_v44, %v889_v7 }
  0xc3   : > { %vm395_vm11 = vmand %vm1428_vm0, %vm1882_vm6  ;;  %vm1912_vm6 = vnez %v1786_v45 }
  0xc4   : > { %vm411_vm14 = vmor %vm329_vm1, %vm395_vm11  ;;  %vm1886_vm11 = vcmp.ge.s32.totalorder %v1112_v44, %v881_v5  ;;  %vm1894_vm1 = vnez %v1764_v22 }
  0xc5   : > { %vm477_vm7 = vmand %vm1442_vm10, %vm1883_vm8  ;;  %vm1889_vm10 = vnez %v1760_v15  ;;  %v592_v15 = vld [vmem:[%s836_s24 + $0x60] sm:$0xff] }
  0xc6   : > { %vm493_vm4 = vmor %vm411_vm14, %vm477_vm7 }
  0xc7   : > { %vm559_vm15 = vmand %vm1456_vm13, %vm1884_vm12  ;;  %vm1890_vm13 = vcmp.lt.s32.totalorder %v1112_v44, %v910_v13 }
  0xc8   : > { %vm575_vm5 = vmor %vm493_vm4, %vm559_vm15  ;;  %vm1891_vm15 = vcmp.ge.s32.totalorder %v1112_v44, %v900_v10 }
  0xc9   : > { %v607_v50 = vsel %vm575_vm5, 0.0, %v591_v49  ;;  %vm1537_vm0 = vmand %vm1886_vm11, %vm1885_vm3  ;;  %vm1895_vm5 = vcmp.lt.s32.totalorder %v1112_v44, %v935_v18  ;;  %vm1896_vm3 = vcmp.ge.s32.totalorder %v1112_v44, %v933_v17  ;;  %v593_v18 = vld [vmem:[%s836_s24 + $0x68] sm:$0xff] }
  0xca   : > { %623 = vst [vmem:[%s841_s27 + $0x58] sm:$0xff] %v607_v50  ;;  %vm248_vm14 = vmand %vm1537_vm0, %vm1889_vm10  ;;  %vm1899_vm10 = vnez %v1770_v29  ;;  %v595_v29 = vld [vmem:[%s836_s24 + $0x78] sm:$0xff] }
  0xcb   : > { %vm1552_vm9 = vmand %vm1891_vm15, %vm1890_vm13 }
  0xcc   : > { %vm314_vm7 = vmand %vm1552_vm9, %vm1894_vm1  ;;  %vm1900_vm1 = vcmp.lt.s32.totalorder %v1112_v44, %v981_v24 }
  0xcd   : > { %vm330_vm4 = vmor %vm248_vm14, %vm314_vm7  ;;  %vm1901_vm14 = vcmp.ge.s32.totalorder %v1112_v44, %v979_v23  ;;  %v594_v23 = vld [vmem:[%s836_s24 + $0x70] sm:$0xff] }
  0xce   : > { %vm1566_vm11 = vmand %vm1896_vm3, %vm1895_vm5  ;;  %vm1904_vm5 = vnez %v1774_v35 }
  0xcf   : > { %vm396_vm13 = vmand %vm1566_vm11, %vm1899_vm10  ;;  %vm1906_vm10 = vcmp.ge.s32.totalorder %v1112_v44, %v1019_v30 }
  0xd0   : > { %vm412_vm15 = vmor %vm330_vm4, %vm396_vm13  ;;  %vm1905_vm4 = vcmp.lt.s32.totalorder %v1112_v44, %v1021_v31 }
  0xd1   : > { %vm1580_vm7 = vmand %vm1901_vm14, %vm1900_vm1  ;;  %vm1909_vm1 = vnez %v1778_v38 }
  0xd2   : > { %vm478_vm3 = vmand %vm1580_vm7, %vm1904_vm5 }
  0xd3   : > { %vm494_vm12 = vmor %vm412_vm15, %vm478_vm3  ;;  %vm1910_vm15 = vnez %v1780_v41  ;;  %vm1911_vm3 = vnez %v1784_v43 }
  0xd4   : > { %vm1594_vm13 = vmand %vm1906_vm10, %vm1905_vm4 }
  0xd5   : > { %vm560_vm14 = vmand %vm1594_vm13, %vm1909_vm1 }
  0xd6   : > { %vm576_vm8 = vmor %vm494_vm12, %vm560_vm14 }
  0xd7   : > { %v608_v17 = vsel %vm576_vm8, 0.0, %v592_v15  ;;  %vm249_vm5 = vmand %vm1537_vm0, %vm1910_vm15  ;;  %vm1913_vm8 = vnez %v1789_v47 }
  0xd8   : > { %624 = vst [vmem:[%s841_s27 + $0x60] sm:$0xff] %v608_v17  ;;  %vm315_vm4 = vmand %vm1552_vm9, %vm1911_vm3 }
  0xd9   : > { %vm331_vm10 = vmor %vm249_vm5, %vm315_vm4  ;;  %vm1915_vm4 = vnez %v1794_v51 }
  0xda   : > { %vm397_vm1 = vmand %vm1566_vm11, %vm1912_vm6 }
  0xdb   : > { %vm413_vm12 = vmor %vm331_vm10, %vm397_vm1  ;;  %vm1916_vm10 = vnez %v1796_v52 }
  0xdc   : > { %vm479_vm14 = vmand %vm1580_vm7, %vm1913_vm8  ;;  %vm1917_vm8 = vnez %v1798_v53 }
  0xdd   : > { %vm495_vm15 = vmor %vm413_vm12, %vm479_vm14 }
  0xde   : > { %vm561_vm3 = vmand %vm1594_vm13, %vm1914_vm2 }
  0xdf   : > { %vm577_vm5 = vmor %vm495_vm15, %vm561_vm3  ;;  %vm1918_vm15 = vnez %v1801_v55 }
  0xe0   : > { %v609_v22 = vsel %vm577_vm5, 0.0, %v593_v18  ;;  %vm250_vm6 = vmand %vm1537_vm0, %vm1915_vm4  ;;  %vm1919_vm4 = vnez %v1803_v56 }
  0xe1   : > { %625 = vst [vmem:[%s841_s27 + $0x68] sm:$0xff] %v609_v22  ;;  %vm316_vm1 = vmand %vm1552_vm9, %vm1916_vm10 }
  0xe2   : > { %vm332_vm12 = vmor %vm250_vm6, %vm316_vm1  ;;  %vm1920_vm1 = vnez %v1805_v59 }
  0xe3   : > { %vm398_vm2 = vmand %vm1566_vm11, %vm1917_vm8  ;;  %vm1921_vm8 = vnez %v1808_v60 }
  0xe4   : > { %vm414_vm14 = vmor %vm332_vm12, %vm398_vm2 }
  0xe5   : > { %vm480_vm3 = vmand %vm1580_vm7, %vm1918_vm15  ;;  %vm1922_vm15 = vnez %v1810_v62 }
  0xe6   : > { %vm496_vm5 = vmor %vm414_vm14, %vm480_vm3 }
  0xe7   : > { %vm562_vm6 = vmand %vm1594_vm13, %vm1919_vm4 }
  0xe8   : > { %vm578_vm10 = vmor %vm496_vm5, %vm562_vm6  ;;  %vm1923_vm5 = vnez %v1812_v0 }
  0xe9   : > { %v610_v24 = vsel %vm578_vm10, 0.0, %v594_v23  ;;  %vm251_vm12 = vmand %vm1537_vm0, %vm1920_vm1  ;;  %vm1924_vm0 = vnez %v1814_v2 }
  0xea   : > { %626 = vst [vmem:[%s841_s27 + $0x70] sm:$0xff] %v610_v24  ;;  %vm317_vm2 = vmand %vm1552_vm9, %vm1921_vm8 }
  0xeb   : > { %vm333_vm14 = vmor %vm251_vm12, %vm317_vm2 }
  0xec   : > { %vm399_vm3 = vmand %vm1566_vm11, %vm1922_vm15 }
  0xed   : > { %vm415_vm4 = vmor %vm333_vm14, %vm399_vm3 }
  0xee   : > { %vm481_vm6 = vmand %vm1580_vm7, %vm1923_vm5 }
  0xef   : > { %vm497_vm10 = vmor %vm415_vm4, %vm481_vm6 }
  0xf0   : > { %vm563_vm1 = vmand %vm1594_vm13, %vm1924_vm0 }
  0xf1   : > { %vm579_vm9 = vmor %vm497_vm10, %vm563_vm1 }
  0xf2   : > { %v611_v30 = vsel %vm579_vm9, 0.0, %v595_v29 }
  0xf3   : > { %627 = vst [vmem:[%s841_s27 + $0x78] sm:$0xff] %v611_v30 }
  0xf4 PF: > { %630 = sbr.rel (%p859_p5) target bundleno = 258 (0x102), region = 32 }
  0xf9   : > { %v631_v31 = vld [vmem:[%s836_s24] sm:$0xff]  ;;  %v632_v35 = vld [vmem:[%s836_s24 + $0x8] sm:$0xff]  ;;  %v633_v38 = vld [vmem:[%s836_s24 + $0x10] sm:$0xff] }
  0xfa   : > { %647 = vst [vmem:[%s841_s27] sm:$0xff] %v631_v31  ;;  %648 = vst [vmem:[%s841_s27 + $0x8] sm:$0xff] %v632_v35  ;;  %v634_v41 = vld [vmem:[%s836_s24 + $0x18] sm:$0xff]  ;;  %v635_v43 = vld [vmem:[%s836_s24 + $0x20] sm:$0xff] }
  0xfb   : > { %649 = vst [vmem:[%s841_s27 + $0x10] sm:$0xff] %v633_v38  ;;  %v636_v44 = vld [vmem:[%s836_s24 + $0x28] sm:$0xff]  ;;  %650 = vst [vmem:[%s841_s27 + $0x18] sm:$0xff] %v634_v41  ;;  %v637_v45 = vld [vmem:[%s836_s24 + $0x30] sm:$0xff] }
  0xfc   : > { %651 = vst [vmem:[%s841_s27 + $0x20] sm:$0xff] %v635_v43  ;;  %652 = vst [vmem:[%s841_s27 + $0x28] sm:$0xff] %v636_v44  ;;  %v638_v47 = vld [vmem:[%s836_s24 + $0x38] sm:$0xff]  ;;  %v639_v48 = vld [vmem:[%s836_s24 + $0x40] sm:$0xff] }
  0xfd   : > { %653 = vst [vmem:[%s841_s27 + $0x30] sm:$0xff] %v637_v45  ;;  %654 = vst [vmem:[%s841_s27 + $0x38] sm:$0xff] %v638_v47  ;;  %v640_v51 = vld [vmem:[%s836_s24 + $0x48] sm:$0xff]  ;;  %v641_v52 = vld [vmem:[%s836_s24 + $0x50] sm:$0xff] }
  0xfe   : > { %655 = vst [vmem:[%s841_s27 + $0x40] sm:$0xff] %v639_v48  ;;  %v642_v53 = vld [vmem:[%s836_s24 + $0x58] sm:$0xff]  ;;  %656 = vst [vmem:[%s841_s27 + $0x48] sm:$0xff] %v640_v51  ;;  %v643_v55 = vld [vmem:[%s836_s24 + $0x60] sm:$0xff] }
  0xff   : > { %657 = vst [vmem:[%s841_s27 + $0x50] sm:$0xff] %v641_v52  ;;  %658 = vst [vmem:[%s841_s27 + $0x58] sm:$0xff] %v642_v53  ;;  %v644_v56 = vld [vmem:[%s836_s24 + $0x68] sm:$0xff]  ;;  %v645_v57 = vld [vmem:[%s836_s24 + $0x70] sm:$0xff] }
 0x100   : > { %659 = vst [vmem:[%s841_s27 + $0x60] sm:$0xff] %v643_v55  ;;  %660 = vst [vmem:[%s841_s27 + $0x68] sm:$0xff] %v644_v56  ;;  %v646_v58 = vld [vmem:[%s836_s24 + $0x78] sm:$0xff] }
 0x101   : > { %661 = vst [vmem:[%s841_s27 + $0x70] sm:$0xff] %v645_v57  ;;  %662 = vst [vmem:[%s841_s27 + $0x78] sm:$0xff] %v646_v58 }
 0x102 PF: > { %s18_s14 = sadd.s32 1, %s799_s14  }
 0x103   : > { %p15_p4 = scmp.ge.s32.totalorder %s18_s14, 4  }
 0x105   :  { %17 = sbr.rel (!%p15_p4) target bundleno = 16 (0x10), region = 62 }

</bundles_post_ra>
